<compile_context>
chip_gen: v6e
topology: v6e:2x2x1
jax: 0.10.0
libtpu: 0.0.40
codegen_flags: <defaults>
</compile_context>

<pallas_src>
import jax
import jax.numpy as jnp
import numpy as np
from jax.experimental import pallas as pl
from jax.experimental.pallas import tpu as pltpu


# ---------------- problem sizes (synthetic, consistent with the module) -------
DISE_NUM = 4                     # number of diseases
SYMP_NUM = 8                     # number of symptoms
NUM_ACTIONS = DISE_NUM + 1       # fc3 output / rule_res width after cat(ones)
ACT_CARD = NUM_ACTIONS           # action one-hot cardinality in the state
SLOT_CARD = DISE_NUM + 1 + SYMP_NUM
INPUT_SHAPE = 2 * ACT_CARD + SLOT_CARD   # state feature width = 23
HIDDEN = 32
BATCH = 2

SLOT_START = 2 * ACT_CARD + DISE_NUM + 1   # 15
SLOT_END = 2 * ACT_CARD + SLOT_CARD        # 23  (SLOT_END - SLOT_START == SYMP_NUM)

LANES = 128      # lane-dense padded feature / output width
SUBLANES = 8     # f32 sublane count (batch padding granularity)


# ---------------------------- Pallas kernel -----------------------------------
def master_kr_dqn_kernel(state_ref, w_ref, b_ref, out_ref):
    # state_ref: (TB, 128)  padded state (cols >= INPUT_SHAPE are zero)
    # w_ref:     (4, 128, 128) packed weights:
    #            [0] W1 (rows 0..22, cols 0..31), [1] W2 (32x32 block),
    #            [2] W3 (rows 0..31, cols 0..4),
    #            [3] sym_dise_mat placed at rows SLOT_START..SLOT_END-1, cols 0..3
    # b_ref:     (8, 128) packed vectors:
    #            row0 b1, row1 b2, row2 b3, row3 ones-column bias (col 4 == 1),
    #            row4 sym_prio placed at cols SLOT_START..SLOT_END-1
    s = state_ref[...]                                           # (TB, 128) f32
    b = b_ref[...]                                               # (8, 128)
    b1 = b[0:1, :]
    b2 = b[1:2, :]
    b3 = b[2:3, :]
    ones_col = b[3:4, :]
    prio = b[4:5, :]

    # --- MLP hot path (MXU matmuls + VPU relu) ---
    h1 = jnp.maximum(
        jnp.dot(s, w_ref[0], preferred_element_type=jnp.float32) + b1, 0.0)
    h2 = jnp.maximum(
        jnp.dot(h1, w_ref[1], preferred_element_type=jnp.float32) + b2, 0.0)
    q = jnp.dot(h2, w_ref[2], preferred_element_type=jnp.float32) + b3

    # --- knowledge branch ---
    # The where() runs over the full padded row; only the slot columns matter
    # because every other row of w_ref[3] is zero (so garbage * 0 contributes
    # nothing). The trailing ones column of rule_res is the `ones_col` bias.
    p = jnp.where(s == 0.0, prio, s)
    p = jnp.where(p == -2.0, prio, p)
    rule = jnp.dot(p, w_ref[3], preferred_element_type=jnp.float32) + ones_col

    # Lane-dense (TB, 128) store; columns >= NUM_ACTIONS are dead (sliced away).
    out_ref[...] = jax.nn.sigmoid(q) + rule


# ------------------------------ wrapper ----------------------------------------
def _pack_params(w1, b1, w2, b2, w3, b3, sym_prio, sym_dise_mat):
    w_stack = jnp.zeros((4, LANES, LANES), jnp.float32)
    w_stack = w_stack.at[0, :INPUT_SHAPE, :HIDDEN].set(w1.astype(jnp.float32))
    w_stack = w_stack.at[1, :HIDDEN, :HIDDEN].set(w2.astype(jnp.float32))
    w_stack = w_stack.at[2, :HIDDEN, :NUM_ACTIONS].set(w3.astype(jnp.float32))
    w_stack = w_stack.at[3, SLOT_START:SLOT_END, :DISE_NUM].set(
        sym_dise_mat.astype(jnp.float32))

    b_stack = jnp.zeros((SUBLANES, LANES), jnp.float32)
    b_stack = b_stack.at[0, :HIDDEN].set(b1.astype(jnp.float32))
    b_stack = b_stack.at[1, :HIDDEN].set(b2.astype(jnp.float32))
    b_stack = b_stack.at[2, :NUM_ACTIONS].set(b3.astype(jnp.float32))
    b_stack = b_stack.at[3, NUM_ACTIONS - 1].set(1.0)          # rule's ones column
    b_stack = b_stack.at[4, SLOT_START:SLOT_END].set(sym_prio.astype(jnp.float32))
    return w_stack, b_stack


def master_kr_dqn_forward(state, w1, b1, w2, b2, w3, b3, sym_prio, sym_dise_mat,
                          *, batch_tile=512):
    """Packs params into 3 DMA slabs, pads batch to sublane multiples, runs a
    1-D ("parallel") batch grid, and slices the lane-dense output back."""
    B = state.shape[0]
    w_stack, b_stack = _pack_params(w1, b1, w2, b2, w3, b3, sym_prio, sym_dise_mat)

    b8 = ((B + SUBLANES - 1) // SUBLANES) * SUBLANES       # sublane-padded batch
    tb = min(batch_tile, b8)                               # batch tile (mult of 8)
    b_pad = ((b8 + tb - 1) // tb) * tb
    num_blocks = b_pad // tb

    state_pad = jnp.zeros((b_pad, LANES), jnp.float32)
    state_pad = state_pad.at[:B, :INPUT_SHAPE].set(state.astype(jnp.float32))

    # advisory cost (useful flops only) so XLA schedules around this tiny call
    flops = 2 * B * (INPUT_SHAPE * HIDDEN + HIDDEN * HIDDEN
                     + HIDDEN * NUM_ACTIONS + SYMP_NUM * DISE_NUM)
    bytes_accessed = 4 * (state_pad.size + w_stack.size + b_stack.size
                          + b_pad * LANES)

    # TODO(synk): for serving-scale batches, cast matmul operands to bf16 on
    # v6e/v7x (keep f32 accumulation) — left in f32 here since B is tiny.
    out = pl.pallas_call(
        master_kr_dqn_kernel,
        out_shape=jax.ShapeDtypeStruct((b_pad, LANES), jnp.float32),
        grid=(num_blocks,),
        in_specs=[
            pl.BlockSpec((tb, LANES), lambda i: (i, 0)),            # state tile
            pl.BlockSpec((4, LANES, LANES), lambda i: (0, 0, 0)),   # weights (resident)
            pl.BlockSpec((SUBLANES, LANES), lambda i: (0, 0)),      # biases (resident)
        ],
        out_specs=pl.BlockSpec((tb, LANES), lambda i: (i, 0)),
        compiler_params=pltpu.CompilerParams(
            dimension_semantics=("parallel",)),
        cost_estimate=pl.CostEstimate(flops=flops,
                                      transcendentals=B * NUM_ACTIONS,
                                      bytes_accessed=bytes_accessed),
    )(state_pad, w_stack, b_stack)

    return out[:B, :NUM_ACTIONS]


# ---------------------------- reference (plain JAX) ----------------------------
def reference_forward(state, w1, b1, w2, b2, w3, b3, sym_prio, sym_dise_mat):
    h1 = jax.nn.relu(state @ w1 + b1)
    h2 = jax.nn.relu(h1 @ w2 + b2)
    q = h2 @ w3 + b3
    slots = state[:, SLOT_START:SLOT_END]
    prio = jnp.broadcast_to(sym_prio[None, :], slots.shape)
    p = jnp.where(slots == 0.0, prio, slots)
    p = jnp.where(p == -2.0, prio, p)
    rule = p @ sym_dise_mat
    rule = jnp.concatenate([rule, jnp.ones((state.shape[0], 1), jnp.float32)], axis=1)
    return jax.nn.sigmoid(q) + rule


# ------------------------------------ main -------------------------------------
if __name__ == "__main__":
    key = jax.random.PRNGKey(0)
    ks = jax.random.split(key, 10)

    # deterministic "PyTorch-Linear-like" init: U(-1/sqrt(fan_in), 1/sqrt(fan_in))
    def lin_init(kw, kb, fan_in, fan_out):
        s = 1.0 / np.sqrt(fan_in)
        w = jax.random.uniform(kw, (fan_in, fan_out), jnp.float32, -s, s)
        b = jax.random.uniform(kb, (fan_out,), jnp.float32, -s, s)
        return w, b

    w1, b1 = lin_init(ks[0], ks[1], INPUT_SHAPE, HIDDEN)
    w2, b2 = lin_init(ks[2], ks[3], HIDDEN, HIDDEN)
    w3, b3 = lin_init(ks[4], ks[5], HIDDEN, NUM_ACTIONS)

    sym_prio = jax.random.uniform(ks[6], (SYMP_NUM,), jnp.float32)
    sym_dise_mat = jax.random.uniform(ks[7], (SYMP_NUM, DISE_NUM), jnp.float32)

    # synthetic state: random features, slot region containing 0 / -2 / 1
    state = jax.random.normal(ks[8], (BATCH, INPUT_SHAPE), jnp.float32)
    slot_vals = jax.random.choice(ks[9], jnp.array([0.0, -2.0, 1.0], jnp.float32),
                                  shape=(BATCH, SYMP_NUM))
    state = state.at[:, SLOT_START:SLOT_END].set(slot_vals)

    out = master_kr_dqn_forward(state, w1, b1, w2, b2, w3, b3,
                                sym_prio, sym_dise_mat)
    out = jax.block_until_ready(out)

    ref = reference_forward(state, w1, b1, w2, b2, w3, b3, sym_prio, sym_dise_mat)
    np.testing.assert_allclose(np.asarray(out), np.asarray(ref), rtol=1e-5, atol=1e-5)

    print("KERNEL_OK")
</pallas_src>

<mosaic_0001>
module attributes {stable_mosaic.version = 11 : i64} {
  func.func @master_kr_dqn_kernel(%arg0: i32, %arg1: memref<8x128xf32, #tpu.memory_space<vmem>>, %arg2: memref<4x128x128xf32, #tpu.memory_space<vmem>>, %arg3: memref<8x128xf32, #tpu.memory_space<vmem>>, %arg4: memref<8x128xf32, #tpu.memory_space<vmem>>) attributes {dimension_semantics = [#tpu.dimension_semantics<parallel>], iteration_bounds = array<i64: 1>, scalar_prefetch = 0 : i64, scratch_operands = 0 : i64, tpu.core_type = #tpu.core_type<tc>, window_params = [{transform_indices = @transform_0, window_bounds = array<i64: 8, 128>}, {pipeline_mode = #tpu.pipeline_mode<synchronous>, transform_indices = @transform_1, window_bounds = array<i64: 4, 128, 128>}, {pipeline_mode = #tpu.pipeline_mode<synchronous>, transform_indices = @transform_2, window_bounds = array<i64: 8, 128>}, {transform_indices = @transform_3, window_bounds = array<i64: 8, 128>}]} {
    %c0 = arith.constant 0 : index
    %c0_0 = arith.constant 0 : index
    %0 = vector.load %arg1[%c0, %c0_0] : memref<8x128xf32, #tpu.memory_space<vmem>>, vector<8x128xf32>
    %c0_1 = arith.constant 0 : index
    %c0_2 = arith.constant 0 : index
    %1 = vector.load %arg3[%c0_1, %c0_2] : memref<8x128xf32, #tpu.memory_space<vmem>>, vector<8x128xf32>
    %2 = vector.extract_strided_slice %1 {offsets = [0, 0], sizes = [1, 128], strides = [1, 1]} : vector<8x128xf32> to vector<1x128xf32>
    %3 = vector.extract_strided_slice %1 {offsets = [1, 0], sizes = [1, 128], strides = [1, 1]} : vector<8x128xf32> to vector<1x128xf32>
    %4 = vector.extract_strided_slice %1 {offsets = [2, 0], sizes = [1, 128], strides = [1, 1]} : vector<8x128xf32> to vector<1x128xf32>
    %5 = vector.extract_strided_slice %1 {offsets = [3, 0], sizes = [1, 128], strides = [1, 1]} : vector<8x128xf32> to vector<1x128xf32>
    %6 = vector.extract_strided_slice %1 {offsets = [4, 0], sizes = [1, 128], strides = [1, 1]} : vector<8x128xf32> to vector<1x128xf32>
    %c0_3 = arith.constant 0 : index
    %c0_4 = arith.constant 0 : index
    %c0_5 = arith.constant 0 : index
    %7 = vector.load %arg2[%c0_3, %c0_4, %c0_5] : memref<4x128x128xf32, #tpu.memory_space<vmem>>, vector<1x128x128xf32>
    %8 = vector.shape_cast %7 : vector<1x128x128xf32> to vector<128x128xf32>
    %cst = arith.constant dense<0.000000e+00> : vector<8x128xf32>
    %9 = tpu.matmul %0, %8, %cst {dimension_numbers = #tpu.dot_dimension_numbers<[1], [0], [0], [1], [0, 0, 1, 1], [], []>} : vector<8x128xf32>, vector<128x128xf32>, vector<8x128xf32> -> vector<8x128xf32>
    %10 = vector.broadcast %2 : vector<1x128xf32> to vector<8x128xf32>
    %11 = arith.addf %9, %10 : vector<8x128xf32>
    %cst_6 = arith.constant 0.000000e+00 : f32
    %12 = vector.broadcast %cst_6 : f32 to vector<8x128xf32>
    %13 = arith.maximumf %11, %12 : vector<8x128xf32>
    %c1 = arith.constant 1 : index
    %c0_7 = arith.constant 0 : index
    %c0_8 = arith.constant 0 : index
    %14 = vector.load %arg2[%c1, %c0_7, %c0_8] : memref<4x128x128xf32, #tpu.memory_space<vmem>>, vector<1x128x128xf32>
    %15 = vector.shape_cast %14 : vector<1x128x128xf32> to vector<128x128xf32>
    %cst_9 = arith.constant dense<0.000000e+00> : vector<8x128xf32>
    %16 = tpu.matmul %13, %15, %cst_9 {dimension_numbers = #tpu.dot_dimension_numbers<[1], [0], [0], [1], [0, 0, 1, 1], [], []>} : vector<8x128xf32>, vector<128x128xf32>, vector<8x128xf32> -> vector<8x128xf32>
    %17 = vector.broadcast %3 : vector<1x128xf32> to vector<8x128xf32>
    %18 = arith.addf %16, %17 : vector<8x128xf32>
    %cst_10 = arith.constant 0.000000e+00 : f32
    %19 = vector.broadcast %cst_10 : f32 to vector<8x128xf32>
    %20 = arith.maximumf %18, %19 : vector<8x128xf32>
    %c2 = arith.constant 2 : index
    %c0_11 = arith.constant 0 : index
    %c0_12 = arith.constant 0 : index
    %21 = vector.load %arg2[%c2, %c0_11, %c0_12] : memref<4x128x128xf32, #tpu.memory_space<vmem>>, vector<1x128x128xf32>
    %22 = vector.shape_cast %21 : vector<1x128x128xf32> to vector<128x128xf32>
    %cst_13 = arith.constant dense<0.000000e+00> : vector<8x128xf32>
    %23 = tpu.matmul %20, %22, %cst_13 {dimension_numbers = #tpu.dot_dimension_numbers<[1], [0], [0], [1], [0, 0, 1, 1], [], []>} : vector<8x128xf32>, vector<128x128xf32>, vector<8x128xf32> -> vector<8x128xf32>
    %24 = vector.broadcast %4 : vector<1x128xf32> to vector<8x128xf32>
    %25 = arith.addf %23, %24 : vector<8x128xf32>
    %cst_14 = arith.constant 0.000000e+00 : f32
    %26 = vector.broadcast %cst_14 : f32 to vector<8x128xf32>
    %27 = arith.cmpf oeq, %0, %26 : vector<8x128xf32>
    %28 = vector.shape_cast %6 : vector<1x128xf32> to vector<1x128xf32>
    %29 = vector.broadcast %28 : vector<1x128xf32> to vector<8x128xf32>
    %30 = arith.select %27, %29, %0 : vector<8x128xi1>, vector<8x128xf32>
    %cst_15 = arith.constant -2.000000e+00 : f32
    %31 = vector.broadcast %cst_15 : f32 to vector<8x128xf32>
    %32 = arith.cmpf oeq, %30, %31 : vector<8x128xf32>
    %33 = vector.shape_cast %6 : vector<1x128xf32> to vector<1x128xf32>
    %34 = vector.broadcast %33 : vector<1x128xf32> to vector<8x128xf32>
    %35 = arith.select %32, %34, %30 : vector<8x128xi1>, vector<8x128xf32>
    %c3 = arith.constant 3 : index
    %c0_16 = arith.constant 0 : index
    %c0_17 = arith.constant 0 : index
    %36 = vector.load %arg2[%c3, %c0_16, %c0_17] : memref<4x128x128xf32, #tpu.memory_space<vmem>>, vector<1x128x128xf32>
    %37 = vector.shape_cast %36 : vector<1x128x128xf32> to vector<128x128xf32>
    %cst_18 = arith.constant dense<0.000000e+00> : vector<8x128xf32>
    %38 = tpu.matmul %35, %37, %cst_18 {dimension_numbers = #tpu.dot_dimension_numbers<[1], [0], [0], [1], [0, 0, 1, 1], [], []>} : vector<8x128xf32>, vector<128x128xf32>, vector<8x128xf32> -> vector<8x128xf32>
    %39 = vector.broadcast %5 : vector<1x128xf32> to vector<8x128xf32>
    %40 = arith.addf %38, %39 : vector<8x128xf32>
    %41 = arith.negf %25 : vector<8x128xf32>
    %42 = math.exp %41 : vector<8x128xf32>
    %cst_19 = arith.constant 1.000000e+00 : f32
    %43 = vector.broadcast %cst_19 : f32 to vector<8x128xf32>
    %44 = arith.addf %43, %42 : vector<8x128xf32>
    %45 = arith.divf %43, %44 : vector<8x128xf32>
    %46 = arith.addf %45, %40 : vector<8x128xf32>
    %c0_20 = arith.constant 0 : index
    %c0_21 = arith.constant 0 : index
    %47 = vector.load %arg4[%c0_20, %c0_21] : memref<8x128xf32, #tpu.memory_space<vmem>>, vector<8x128xf32>
    tpu.vector_store %arg4[%c0_20, %c0_21], %46 {strides = array<i32>} : memref<8x128xf32, #tpu.memory_space<vmem>>, vector<8x128xf32>,
    return
  }
  func.func @transform_0(%arg0: i32) -> (i32, i32) {
    %c0_i32 = arith.constant 0 : i32
    %c0_i32_0 = arith.constant 0 : i32
    return %arg0, %c0_i32 : i32, i32
  }
  func.func @transform_1(%arg0: i32) -> (i32, i32, i32) {
    %c0_i32 = arith.constant 0 : i32
    %c0_i32_0 = arith.constant 0 : i32
    %c0_i32_1 = arith.constant 0 : i32
    %c0_i32_2 = arith.constant 0 : i32
    return %c0_i32, %c0_i32_0, %c0_i32_1 : i32, i32, i32
  }
  func.func @transform_2(%arg0: i32) -> (i32, i32) {
    %c0_i32 = arith.constant 0 : i32
    %c0_i32_0 = arith.constant 0 : i32
    %c0_i32_1 = arith.constant 0 : i32
    return %c0_i32, %c0_i32_0 : i32, i32
  }
  func.func @transform_3(%arg0: i32) -> (i32, i32) {
    %c0_i32 = arith.constant 0 : i32
    %c0_i32_0 = arith.constant 0 : i32
    return %arg0, %c0_i32 : i32, i32
  }
}

</mosaic_0001>

<bundles_post_ra>
// kernel: tpu_custom_call.1
= control target key start
LH: loop header
LB: loop body
LE: loop exit
PB: predicated region body
PF: predicated region fallthrough
CT: control target
= control target key end

     0   :  { %8 = vsyncpa [#allocation3], 0  ;;  %s889_s0 = inlined_call_operand.hbm [shape: f32[8,128], index: 0, kind: input, shape index: {}]   ;;  %s890_s1 = inlined_call_operand.hbm [shape: f32[4,128,128], index: 1, kind: input, shape index: {}]   ;;  %s891_s2 = inlined_call_operand.hbm [shape: f32[8,128], index: 2, kind: input, shape index: {}]   ;;  %s892_s3 = inlined_call_operand.hbm [shape: f32[8,128], index: 3, kind: output, shape index: {}]  }
   0x1   :  { %9 = vsyncpa [#allocation6], 0 }
   0x2   :  { %10 = vsyncpa [#allocation4], 0  ;;  %s758_s12 = smov [#allocation5]  }
   0x3   :  { %s26_s13 = sshll.u32 %s758_s12, 4  ;;  %s27_s13 = int_to_ptr.vmem [resolvable:$true] %s26_s13 }
   0x4   :  { %s680_s14 = scalar_lea.vmem %s27_s13, 8192  ;;  %p685_p1 = scmp.lt.s32.totalorder %s27_s13, %s27_s13 }
   0x5   :  { %p681_p0 = scmp.ne.s32.totalorder %s27_s13, %s680_s14  ;;  %p686_p2 = scmp.lt.s32.totalorder %s680_s14, %s680_s14 }
   0x7   :  { %p687_p3 = por %p686_p2, %p685_p1 }
   0x9   :  { %p688_p4 = pnand %p687_p3, %p681_p0 }
   0xb   :  { %691 = shalt.err (!%p688_p4)
}
   0xc   :  { %s759_s15 = smov 128   ;;  %s760_s16 = smov 8  }
   0xd   :  { %32 = dma.hbm_to_vmem [thread:$0]  %s890_s1, 8192, %s27_s13, [#allocation6], %s759_s15, %s759_s15, %s760_s16  }
   0xe   :  { %s761_s19 = smov [#allocation2]   ;;  %s762_s21 = smov [#allocation7]  }
   0xf   :  { %s17_s20 = sshll.u32 %s761_s19, 4  ;;  %s39_s22 = sshll.u32 %s762_s21, 4  ;;  %s18_s20 = int_to_ptr.vmem [resolvable:$true] %s17_s20  ;;  %s40_s22 = int_to_ptr.vmem [resolvable:$true] %s39_s22 }
  0x10   :  { %s700_s23 = scalar_lea.vmem %s18_s20, 128  ;;  %p705_p6 = scmp.lt.s32.totalorder %s18_s20, %s18_s20 }
  0x11   :  { %p701_p5 = scmp.ne.s32.totalorder %s18_s20, %s700_s23  ;;  %p706_p7 = scmp.lt.s32.totalorder %s700_s23, %s700_s23 }
  0x13   :  { %p707_p8 = por %p706_p7, %p705_p6 }
  0x15   :  { %p708_p9 = pnand %p707_p8, %p701_p5 }
  0x17   :  { %711 = shalt.err (!%p708_p9)
}
  0x18   :  { %20 = dma.hbm_to_vmem [thread:$0]  %s889_s0, 128, %s18_s20, [#allocation3]  }
  0x19   :  { %s720_s26 = scalar_lea.vmem %s40_s22, 128  ;;  %p725_p11 = scmp.lt.s32.totalorder %s40_s22, %s40_s22 }
  0x1a   :  { %p721_p10 = scmp.ne.s32.totalorder %s40_s22, %s720_s26  ;;  %p726_p12 = scmp.lt.s32.totalorder %s720_s26, %s720_s26 }
  0x1c   :  { %p727_p13 = por %p726_p12, %p725_p11 }
  0x1e   :  { %p728_p0 = pnand %p727_p13, %p721_p10 }
  0x20   :  { %731 = shalt.err (!%p728_p0)
}
  0x21   :  { %42 = dma.hbm_to_vmem [thread:$0]  %s891_s2, 128, %s40_s22, [#allocation6]  }
  0x22   :  { %752 = dma.done.wait [#allocation3], 128  }
  0x23   :  { %753 = vsyncadd [#allocation3], 4294967168 }
  0x24   :  { %754 = dma.done.wait [#allocation6], 8320  }
  0x25   :  { %755 = vsyncadd [#allocation6], 4294958976  ;;  %v763_v0 = vmov 0.0   ;;  %vm764_vm0 = vmmov 0   ;;  %v69_v1 = vld [vmem:[#allocation5 + $0x78] sm:$0xff]  ;;  %v68_v2 = vld [vmem:[#allocation5 + $0x70] sm:$0xff]  ;;  %v70_v47 = vlaneseq }
  0x26   :  { %520 = vmatprep.subr.mxu0 %v763_v0  ;;  %552 = vmatprep.mubr.msk.f32.mxu0 %vm764_vm0, %v763_v0  ;;  %v67_v3 = vld [vmem:[#allocation5 + $0x68] sm:$0xff]  ;;  %v66_v4 = vld [vmem:[#allocation5 + $0x60] sm:$0xff]  ;;  %v65_v5 = vld [vmem:[#allocation5 + $0x58] sm:$0xff]  ;;  %s765_s0 = smov [#allocation8]  }
  0x27   :  { %555 = vmatprep.subr.mxu1 %v763_v0  ;;  %587 = vmatprep.mubr.msk.f32.mxu1 %vm764_vm0, %v763_v0  ;;  %v161_v6 = vld [vmem:[#allocation5 + $0xf8] sm:$0xff]  ;;  %v160_v7 = vld [vmem:[#allocation5 + $0xf0] sm:$0xff]  ;;  %v159_v9 = vld [vmem:[#allocation5 + $0xe8] sm:$0xff]  ;;  %v851_v48 = vshrl.u32 %v70_v47, 7  ;;  %s441_s2 = sshll.u32 %s765_s0, 4  ;;  %s442_s2 = int_to_ptr.vmem [resolvable:$true] %s441_s2 }
  0x28   :  { %521 = vmatpush3.msra.mxu0 %v69_v1  ;;  %556 = vmatpush3.msra.mxu1 %v161_v6  ;;  %v64_v8 = vld [vmem:[#allocation5 + $0x50] sm:$0xff]  ;;  %v63_v10 = vld [vmem:[#allocation5 + $0x48] sm:$0xff]  ;;  %v158_v11 = vld [vmem:[#allocation5 + $0xe0] sm:$0xff]  ;;  %s732_s28 = scalar_lea.vmem %s442_s2, 128  ;;  %p737_p2 = scmp.lt.s32.totalorder %s442_s2, %s442_s2 }
  0x29   :  { %522 = vmatprep.subr.mxu0 %v763_v0  ;;  %557 = vmatprep.subr.mxu1 %v763_v0  ;;  %v62_v12 = vld [vmem:[#allocation5 + $0x40] sm:$0xff]  ;;  %v157_v13 = vld [vmem:[#allocation5 + $0xd8] sm:$0xff]  ;;  %v156_v15 = vld [vmem:[#allocation5 + $0xd0] sm:$0xff]  ;;  %v72_v49 = vsub.s32 0, %v851_v48  ;;  %p733_p1 = scmp.ne.s32.totalorder %s442_s2, %s732_s28  ;;  %p738_p3 = scmp.lt.s32.totalorder %s732_s28, %s732_s28 }
  0x2a   :  { %523 = vmatpush3.msra.mxu0 %v68_v2  ;;  %558 = vmatpush3.msra.mxu1 %v160_v7  ;;  %v61_v14 = vld [vmem:[#allocation5 + $0x38] sm:$0xff]  ;;  %v60_v16 = vld [vmem:[#allocation5 + $0x30] sm:$0xff]  ;;  %v155_v17 = vld [vmem:[#allocation5 + $0xc8] sm:$0xff] }
  0x2b   :  { %524 = vmatprep.subr.mxu0 %v763_v0  ;;  %559 = vmatprep.subr.mxu1 %v763_v0  ;;  %v59_v18 = vld [vmem:[#allocation5 + $0x28] sm:$0xff]  ;;  %v154_v19 = vld [vmem:[#allocation5 + $0xc0] sm:$0xff]  ;;  %v153_v21 = vld [vmem:[#allocation5 + $0xb8] sm:$0xff]  ;;  %p739_p4 = por %p738_p3, %p737_p2 }
  0x2c   :  { %525 = vmatpush3.msra.mxu0 %v67_v3  ;;  %560 = vmatpush3.msra.mxu1 %v159_v9  ;;  %v58_v20 = vld [vmem:[#allocation5 + $0x20] sm:$0xff]  ;;  %v57_v22 = vld [vmem:[#allocation5 + $0x18] sm:$0xff]  ;;  %v152_v23 = vld [vmem:[#allocation5 + $0xb0] sm:$0xff] }
  0x2d   :  { %526 = vmatprep.subr.mxu0 %v763_v0  ;;  %561 = vmatprep.subr.mxu1 %v763_v0  ;;  %v56_v24 = vld [vmem:[#allocation5 + $0x10] sm:$0xff]  ;;  %v151_v25 = vld [vmem:[#allocation5 + $0xa8] sm:$0xff]  ;;  %v150_v27 = vld [vmem:[#allocation5 + $0xa0] sm:$0xff]  ;;  %p740_p5 = pnand %p739_p4, %p733_p1 }
  0x2e   :  { %527 = vmatpush3.msra.mxu0 %v66_v4  ;;  %562 = vmatpush3.msra.mxu1 %v158_v11  ;;  %v55_v26 = vld [vmem:[#allocation5 + $0x8] sm:$0xff]  ;;  %v54_v28 = vld [vmem:[#allocation5] sm:$0xff]  ;;  %v149_v29 = vld [vmem:[#allocation5 + $0x98] sm:$0xff] }
  0x2f   :  { %528 = vmatprep.subr.mxu0 %v763_v0  ;;  %563 = vmatprep.subr.mxu1 %v763_v0  ;;  %v826_v30 = vld [vmem:[#allocation2] sm:$0xff]  ;;  %v148_v31 = vld [vmem:[#allocation5 + $0x90] sm:$0xff]  ;;  %v147_v32 = vld [vmem:[#allocation5 + $0x88] sm:$0xff] }
  0x30   :  { %529 = vmatpush3.msra.mxu0 %v65_v5  ;;  %564 = vmatpush3.msra.mxu1 %v157_v13  ;;  %v146_v33 = vld [vmem:[#allocation5 + $0x80] sm:$0xff]  ;;  %v253_v34 = vld [vmem:[#allocation5 + $0x178] sm:$0xff]  ;;  %v252_v35 = vld [vmem:[#allocation5 + $0x170] sm:$0xff]  ;;  %v331_v5 = vsub.s32 4, %v851_v48  ;;  %vm328_vm1 = vcmp.eq.f32.partialorder %v826_v30, 0.0 }
  0x31   :  { %530 = vmatprep.subr.mxu0 %v763_v0  ;;  %565 = vmatprep.subr.mxu1 %v763_v0  ;;  %v251_v36 = vld [vmem:[#allocation5 + $0x168] sm:$0xff]  ;;  %v250_v37 = vld [vmem:[#allocation5 + $0x160] sm:$0xff]  ;;  %v249_v38 = vld [vmem:[#allocation5 + $0x158] sm:$0xff] }
  0x32   :  { %531 = vmatpush3.msra.mxu0 %v64_v8  ;;  %566 = vmatpush3.msra.mxu1 %v156_v15  ;;  %v248_v39 = vld [vmem:[#allocation5 + $0x150] sm:$0xff]  ;;  %v247_v40 = vld [vmem:[#allocation5 + $0x148] sm:$0xff]  ;;  %v246_v41 = vld [vmem:[#allocation5 + $0x140] sm:$0xff] }
  0x33   :  { %532 = vmatprep.subr.mxu0 %v763_v0  ;;  %567 = vmatprep.subr.mxu1 %v763_v0  ;;  %v245_v42 = vld [vmem:[#allocation5 + $0x138] sm:$0xff]  ;;  %v244_v43 = vld [vmem:[#allocation5 + $0x130] sm:$0xff]  ;;  %v243_v44 = vld [vmem:[#allocation5 + $0x128] sm:$0xff] }
  0x34   :  { %533 = vmatpush3.msra.mxu0 %v63_v10  ;;  %568 = vmatpush3.msra.mxu1 %v155_v17  ;;  %v242_v45 = vld [vmem:[#allocation5 + $0x120] sm:$0xff]  ;;  %v241_v46 = vld [vmem:[#allocation5 + $0x118] sm:$0xff]  ;;  %v240_v56 = vld [vmem:[#allocation5 + $0x110] sm:$0xff] }
  0x35   :  { %534 = vmatprep.subr.mxu0 %v763_v0  ;;  %569 = vmatprep.subr.mxu1 %v763_v0  ;;  %v854_v50 = vld [vmem:[#allocation7] sm:$0xff]  ;;  %v239_v57 = vld [vmem:[#allocation5 + $0x108] sm:$0xff]  ;;  %v352_v59 = vld [vmem:[#allocation5 + $0x1f8] sm:$0xff] }
  0x36   :  { %535 = vmatpush3.msra.mxu0 %v62_v12  ;;  %570 = vmatpush3.msra.mxu1 %v154_v19  ;;  %v73_v51 = vrot.slane %v854_v50, %v72_v49  ;;  %v238_v58 = vld [vmem:[#allocation5 + $0x100] sm:$0xff]  ;;  %v351_v60 = vld [vmem:[#allocation5 + $0x1f0] sm:$0xff]  ;;  %v350_v61 = vld [vmem:[#allocation5 + $0x1e8] sm:$0xff]  ;;  %v332_v8 = vrot.slane %v854_v50, %v331_v5 }
  0x37   :  { %536 = vmatprep.subr.mxu0 %v763_v0  ;;  %571 = vmatprep.subr.mxu1 %v763_v0  ;;  %v349_v62 = vld [vmem:[#allocation5 + $0x1e0] sm:$0xff]  ;;  %v348_v63 = vld [vmem:[#allocation5 + $0x1d8] sm:$0xff]  ;;  %v347_v1 = vld [vmem:[#allocation5 + $0x1d0] sm:$0xff] }
  0x38   :  { %537 = vmatpush3.msra.mxu0 %v61_v14  ;;  %572 = vmatpush3.msra.mxu1 %v153_v21  ;;  %v346_v2 = vld [vmem:[#allocation5 + $0x1c8] sm:$0xff]  ;;  %v345_v3 = vld [vmem:[#allocation5 + $0x1c0] sm:$0xff]  ;;  %v344_v4 = vld [vmem:[#allocation5 + $0x1b8] sm:$0xff]  ;;  %v333_v11 = vsel %vm328_vm1, %v332_v8, %v826_v30 }
  0x39   :  { %538 = vmatprep.subr.mxu0 %v763_v0  ;;  %573 = vmatprep.subr.mxu1 %v763_v0  ;;  %v343_v6 = vld [vmem:[#allocation5 + $0x1b0] sm:$0xff]  ;;  %v342_v7 = vld [vmem:[#allocation5 + $0x1a8] sm:$0xff]  ;;  %v341_v9 = vld [vmem:[#allocation5 + $0x1a0] sm:$0xff]  ;;  %vm334_vm2 = vcmp.eq.f32.partialorder %v333_v11, -2.0 }
  0x3a   :  { %539 = vmatpush3.msra.mxu0 %v60_v16  ;;  %574 = vmatpush3.msra.mxu1 %v152_v23  ;;  %v340_v10 = vld [vmem:[#allocation5 + $0x198] sm:$0xff]  ;;  %v339_v12 = vld [vmem:[#allocation5 + $0x190] sm:$0xff]  ;;  %v338_v13 = vld [vmem:[#allocation5 + $0x188] sm:$0xff]  ;;  %v335_v15 = vsel %vm334_vm2, %v332_v8, %v333_v11  ;;  %v164_v16 = vsub.s32 1, %v851_v48 }
  0x3b   :  { %540 = vmatprep.subr.mxu0 %v763_v0  ;;  %575 = vmatprep.subr.mxu1 %v763_v0  ;;  %v337_v14 = vld [vmem:[#allocation5 + $0x180] sm:$0xff] }
  0x3c   :  { %541 = vmatpush3.msra.mxu0 %v59_v18  ;;  %576 = vmatpush3.msra.mxu1 %v151_v25  ;;  %v165_v17 = vrot.slane %v854_v50, %v164_v16 }
  0x3d   :  { %542 = vmatprep.subr.mxu0 %v763_v0  ;;  %577 = vmatprep.subr.mxu1 %v763_v0 }
  0x3e   :  { %543 = vmatpush3.msra.mxu0 %v58_v20  ;;  %578 = vmatpush3.msra.mxu1 %v150_v27 }
  0x3f   :  { %544 = vmatprep.subr.mxu0 %v763_v0  ;;  %579 = vmatprep.subr.mxu1 %v763_v0 }
  0x40   :  { %545 = vmatpush3.msra.mxu0 %v57_v22  ;;  %580 = vmatpush3.msra.mxu1 %v149_v29 }
  0x41   :  { %546 = vmatprep.subr.mxu0 %v763_v0  ;;  %581 = vmatprep.subr.mxu1 %v763_v0 }
  0x42   :  { %547 = vmatpush3.msra.mxu0 %v56_v24  ;;  %582 = vmatpush3.msra.mxu1 %v148_v31  ;;  %v256_v24 = vsub.s32 2, %v851_v48  ;;  %v355_v31 = vsub.s32 3, %v851_v48 }
  0x43   :  { %548 = vmatprep.subr.mxu0 %v763_v0  ;;  %583 = vmatprep.subr.mxu1 %v763_v0 }
  0x44   :  { %549 = vmatpush3.msra.mxu0 %v55_v26  ;;  %584 = vmatpush3.msra.mxu1 %v147_v32  ;;  %v257_v25 = vrot.slane %v854_v50, %v256_v24  ;;  %v356_v32 = vrot.slane %v854_v50, %v355_v31 }
  0x45   :  { %550 = vmatprep.subr.mxu0 %v763_v0  ;;  %585 = vmatprep.subr.mxu1 %v763_v0 }
  0x46   :  { %551 = vmatpush3.msra.mxu0 %v54_v28  ;;  %586 = vmatpush3.msra.mxu1 %v146_v33 }
  0x47   :  { %553 = vmatmul.mubr.f32.vlgmr.msra.gmra.mxu0 %v826_v30  ;;  %590 = vmatprep.subr.mxu0 %v763_v0 }
  0x48   :  { %622 = vmatprep.mubr.msk.f32.mxu0 %vm764_vm0, %v763_v0  ;;  %625 = vmatprep.subr.mxu1 %v763_v0 }
  0x49   :  { %591 = vmatpush3.msra.mxu0 %v253_v34 }
  0x4a   :  { %592 = vmatprep.subr.mxu0 %v763_v0 }
  0x4b   :  { %593 = vmatpush3.msra.mxu0 %v252_v35 }
  0x4c   :  { %594 = vmatprep.subr.mxu0 %v763_v0 }
  0x4d   :  { %595 = vmatpush3.msra.mxu0 %v251_v36 }
  0x4e   :  { %596 = vmatprep.subr.mxu0 %v763_v0 }
  0x4f   :  { %597 = vmatpush3.msra.mxu0 %v250_v37 }
  0x50   :  { %598 = vmatprep.subr.mxu0 %v763_v0 }
  0x51   :  { %599 = vmatpush3.msra.mxu0 %v249_v38 }
  0x52   :  { %600 = vmatprep.subr.mxu0 %v763_v0 }
  0x53   :  { %601 = vmatpush3.msra.mxu0 %v248_v39 }
  0x54   :  { %602 = vmatprep.subr.mxu0 %v763_v0 }
  0x55   :  { %603 = vmatpush3.msra.mxu0 %v247_v40 }
  0x56   :  { %604 = vmatprep.subr.mxu0 %v763_v0 }
  0x57   :  { %605 = vmatpush3.msra.mxu0 %v246_v41 }
  0x58   :  { %606 = vmatprep.subr.mxu0 %v763_v0 }
  0x59   :  { %607 = vmatpush3.msra.mxu0 %v245_v42 }
  0x5a   :  { %608 = vmatprep.subr.mxu0 %v763_v0 }
  0x5b   :  { %609 = vmatpush3.msra.mxu0 %v244_v43 }
  0x5c   :  { %610 = vmatprep.subr.mxu0 %v763_v0 }
  0x5d   :  { %611 = vmatpush3.msra.mxu0 %v243_v44 }
  0x5e   :  { %612 = vmatprep.subr.mxu0 %v763_v0 }
  0x5f   :  { %613 = vmatpush3.msra.mxu0 %v242_v45 }
  0x60   :  { %614 = vmatprep.subr.mxu0 %v763_v0 }
  0x61   :  { %615 = vmatpush3.msra.mxu0 %v241_v46 }
  0x62   :  { %616 = vmatprep.subr.mxu0 %v763_v0 }
  0x63   :  { %617 = vmatpush3.msra.mxu0 %v240_v56 }
  0x64   :  { %618 = vmatprep.subr.mxu0 %v763_v0 }
  0x65   :  { %619 = vmatpush3.msra.mxu0 %v239_v57 }
  0x66   :  { %620 = vmatprep.subr.mxu0 %v763_v0 }
  0x67   :  { %621 = vmatpush3.msra.mxu0 %v238_v58 }
 0x107   :  { %v140_v52 = vpop.f32.mrf.mxu0 }
 0x108   :  { %v141_v53 = vadd.f32 %v140_v52, %v73_v51 }
 0x109   :  { %v554_v54 = vpop.f32.mrf.mxu0 }
 0x10a   :  { %v144_v55 = vmax.f32 %v141_v53, 0.0 }
 0x10c   :  { %588 = vmatmul.mubr.f32.vlgmr.msra.gmra.mxu1 %v144_v55 }
 0x10d   :  { %657 = vmatprep.mubr.msk.f32.mxu1 %vm764_vm0, %v763_v0  ;;  %626 = vmatpush3.msra.mxu1 %v352_v59 }
 0x10e   :  { %627 = vmatprep.subr.mxu1 %v763_v0 }
 0x10f   :  { %628 = vmatpush3.msra.mxu1 %v351_v60 }
 0x110   :  { %629 = vmatprep.subr.mxu1 %v763_v0 }
 0x111   :  { %630 = vmatpush3.msra.mxu1 %v350_v61 }
 0x112   :  { %631 = vmatprep.subr.mxu1 %v763_v0 }
 0x113   :  { %632 = vmatpush3.msra.mxu1 %v349_v62 }
 0x114   :  { %633 = vmatprep.subr.mxu1 %v763_v0 }
 0x115   :  { %634 = vmatpush3.msra.mxu1 %v348_v63 }
 0x116   :  { %635 = vmatprep.subr.mxu1 %v763_v0 }
 0x117   :  { %636 = vmatpush3.msra.mxu1 %v347_v1 }
 0x118   :  { %637 = vmatprep.subr.mxu1 %v763_v0 }
 0x119   :  { %638 = vmatpush3.msra.mxu1 %v346_v2 }
 0x11a   :  { %639 = vmatprep.subr.mxu1 %v763_v0 }
 0x11b   :  { %640 = vmatpush3.msra.mxu1 %v345_v3 }
 0x11c   :  { %641 = vmatprep.subr.mxu1 %v763_v0 }
 0x11d   :  { %642 = vmatpush3.msra.mxu1 %v344_v4 }
 0x11e   :  { %643 = vmatprep.subr.mxu1 %v763_v0 }
 0x11f   :  { %644 = vmatpush3.msra.mxu1 %v343_v6 }
 0x120   :  { %645 = vmatprep.subr.mxu1 %v763_v0 }
 0x121   :  { %646 = vmatpush3.msra.mxu1 %v342_v7 }
 0x122   :  { %647 = vmatprep.subr.mxu1 %v763_v0 }
 0x123   :  { %648 = vmatpush3.msra.mxu1 %v341_v9 }
 0x124   :  { %649 = vmatprep.subr.mxu1 %v763_v0 }
 0x125   :  { %650 = vmatpush3.msra.mxu1 %v340_v10 }
 0x126   :  { %651 = vmatprep.subr.mxu1 %v763_v0 }
 0x127   :  { %652 = vmatpush3.msra.mxu1 %v339_v12 }
 0x128   :  { %653 = vmatprep.subr.mxu1 %v763_v0 }
 0x129   :  { %654 = vmatpush3.msra.mxu1 %v338_v13 }
 0x12a   :  { %655 = vmatprep.subr.mxu1 %v763_v0 }
 0x12b   :  { %656 = vmatpush3.msra.mxu1 %v337_v14 }
 0x12c   :  { %658 = vmatmul.mubr.f32.vlgmr.msra.gmra.mxu1 %v335_v15 }
 0x1cc   :  { %v232_v18 = vpop.f32.mrf.mxu1 }
 0x1cd   :  { %v233_v19 = vadd.f32 %v232_v18, %v165_v17 }
 0x1ce   :  { %v589_v20 = vpop.f32.mrf.mxu1 }
 0x1cf   :  { %v236_v21 = vmax.f32 %v233_v19, 0.0 }
 0x1d1   :  { %623 = vmatmul.mubr.f32.vlgmr.msra.gmra.mxu0 %v236_v21 }
 0x1ec   :  { %v423_v22 = vpop.f32.mrf.mxu1 }
 0x1ed   :  { %v424_v33 = vadd.f32 %v423_v22, %v356_v32 }
 0x1ee   :  { %v659_v23 = vpop.f32.mrf.mxu1 }
 0x291   :  { %v324_v26 = vpop.f32.mrf.mxu0 }
 0x292   :  { %v325_v27 = vadd.f32 %v324_v26, %v257_v25 }
 0x293   :  { %v624_v0 = vpop.f32.mrf.mxu0 }
 0x294   :  { %v451_v28 = vmul.f32 -1.442695, %v325_v27 }
 0x296   :  { %668 = vpow2.f32 %v451_v28 }
 0x2a3   :  { %v669_v29 = vpop.eup %668 }
 0x2a4   :  { %v430_v30 = vadd.f32 1.0, %v669_v29 }
 0x2a6   :  { %670 = vrcp.f32 %v430_v30 }
 0x2b3   :  { %v671_v34 = vpop.eup %670 }
 0x2b4   :  { %v433_v35 = vadd.f32 %v671_v34, %v424_v33 }
 0x2b6   :  { %434 = vst [vmem:[#allocation8] sm:$0xff] %v433_v35 }
 0x2b7   :  { %743 = shalt.err (!%p740_p5)
}
 0x2b8   :  { %444 = dma.vmem_to_hbm [thread:$0]  %s442_s2, 128, %s892_s3, [#allocation4]  }
 0x2b9   :  { %756 = dma.done.wait [#allocation4], 128  }
 0x2ba   :  { %757 = vsyncadd [#allocation4], 4294967168 }
 0x2bb   :  { %448 = vsyncpa [#allocation3], 1 }
 0x2bc   :  { %449 = vsyncpa [#allocation6], 1 }
 0x2bd   :  { %450 = vsyncpa [#allocation4], 1 }

</bundles_post_ra>
